<compile_context>
chip_gen: v7x
topology: tpu7x:2x2x1
jax: 0.10.0
libtpu: 0.0.40
codegen_flags: <defaults>
</compile_context>

<pallas_src>
import jax
import jax.numpy as jnp
from jax.experimental import pallas as pl
from jax.experimental.pallas import tpu as pltpu


def _make_bce_ls_kernel(smoothing: float, row_tile: int, n_rows: int,
                        need_mask: bool):
    smoothing = float(smoothing)

    def kernel(logits_ref, targets_ref, out_ref):
        x = logits_ref[...].astype(jnp.float32)
        t = targets_ref[...].astype(jnp.float32)

        # label smoothing: t*(1-s) + s*(1-t) == t*(1-2s) + s
        t = t * (1.0 - 2.0 * smoothing) + smoothing

        # numerically-stable BCE with logits (same formula PyTorch uses):
        #   max(x,0) - x*t + log(1 + exp(-|x|))
        per_elem = (jnp.maximum(x, 0.0)
                    - x * t
                    + jnp.log1p(jnp.exp(-jnp.abs(x))))

        if need_mask:
            # Ragged batch: last block may read past the array; zero those rows.
            i = pl.program_id(0)
            row = (jax.lax.broadcasted_iota(jnp.int32, per_elem.shape, 0)
                   + i * row_tile)
            per_elem = jnp.where(row < n_rows, per_elem, 0.0)

        # Sublane-only reduce -> (1, C) per-block partial sums. The single
        # cross-lane reduce + mean is done once in the JAX wrapper epilogue.
        out_ref[...] = jnp.sum(per_elem, axis=0, keepdims=True)

    return kernel


def multilabel_loss_with_label_smoothing(logits, targets, smoothing=0.2,
                                         *, max_block_bytes=6 << 20):
    """Pallas TPU implementation of MultiLabelLossWithLabelSmoothing.forward."""
    assert logits.shape == targets.shape
    n_elems = logits.size

    # Flatten any leading dims to a 2-D (rows, C) multi-label layout.
    C = logits.shape[-1]
    x2d = logits.reshape(-1, C)
    t2d = targets.reshape(-1, C)
    B = x2d.shape[0]

    itemsize = max(x2d.dtype.itemsize, t2d.dtype.itemsize)

    # Largest row tile whose per-input block fits the budget. Keep multiples of
    # 16 (bf16 sublane packing; also satisfies the (8,128) block constraint).
    rows_fit = max(1, max_block_bytes // (C * itemsize))
    if rows_fit >= B:
        row_tile = B                      # whole array as a single block/step
    else:
        row_tile = max(16, (rows_fit // 16) * 16)

    grid_rows = pl.cdiv(B, row_tile)
    need_mask = (grid_rows * row_tile != B)

    kernel = _make_bce_ls_kernel(smoothing, row_tile, B, need_mask)

    bytes_accessed = (x2d.size * x2d.dtype.itemsize
                      + t2d.size * t2d.dtype.itemsize
                      + grid_rows * C * 4)
    cost = pl.CostEstimate(flops=7 * n_elems,
                           transcendentals=2 * n_elems,
                           bytes_accessed=bytes_accessed)

    partials = pl.pallas_call(
        kernel,
        out_shape=jax.ShapeDtypeStruct((grid_rows, C), jnp.float32),
        grid_spec=pltpu.PrefetchScalarGridSpec(
            num_scalar_prefetch=0,
            grid=(grid_rows,),
            in_specs=[
                pl.BlockSpec((row_tile, C), lambda i: (i, 0)),
                pl.BlockSpec((row_tile, C), lambda i: (i, 0)),
            ],
            out_specs=pl.BlockSpec((1, C), lambda i: (i, 0)),
        ),
        compiler_params=pltpu.CompilerParams(
            dimension_semantics=("parallel",),   # independent blocks -> megacore
            vmem_limit_bytes=48 << 20,           # safe on v5e/v6e and v7x (64 MiB)
        ),
        cost_estimate=cost,
    )(x2d, t2d)

    total = jnp.sum(partials, dtype=jnp.float32)
    return total / jnp.float32(n_elems)


def _reference(logits, targets, smoothing=0.2):
    """Pure-JAX reference mirroring the PyTorch module (computed in f32)."""
    x = logits.astype(jnp.float32)
    t = targets.astype(jnp.float32)
    t = t * (1.0 - smoothing) + smoothing * (1.0 - t)
    per = jnp.maximum(x, 0.0) - x * t + jnp.log1p(jnp.exp(-jnp.abs(x)))
    return jnp.mean(per)


if __name__ == "__main__":
    key = jax.random.PRNGKey(0)
    k1, k2, k3, k4 = jax.random.split(key, 4)

    # Test 1: small multi-label problem, f32, single-block fast path.
    B, C = 16, 128
    logits = jax.random.normal(k1, (B, C), dtype=jnp.float32) * 2.0
    targets = (jax.random.uniform(k2, (B, C)) < 0.3).astype(jnp.float32)

    loss = multilabel_loss_with_label_smoothing(logits, targets, smoothing=0.2)
    loss = jax.block_until_ready(loss)
    ref = _reference(logits, targets, smoothing=0.2)
    assert jnp.allclose(loss, ref, rtol=1e-5, atol=1e-5), (loss, ref)

    # Test 2: ragged batch (B=40) + bf16 inputs; small max_block_bytes forces
    # the tiled path (row_tile=16, grid=3) and exercises the edge-row mask.
    B2, C2 = 40, 128
    logits2 = (jax.random.normal(k3, (B2, C2), dtype=jnp.float32)
               * 2.0).astype(jnp.bfloat16)
    targets2 = (jax.random.uniform(k4, (B2, C2)) < 0.3).astype(jnp.bfloat16)

    loss2 = multilabel_loss_with_label_smoothing(
        logits2, targets2, smoothing=0.2, max_block_bytes=16 * C2 * 2)
    loss2 = jax.block_until_ready(loss2)
    ref2 = _reference(logits2, targets2, smoothing=0.2)
    assert jnp.allclose(loss2, ref2, rtol=1e-4, atol=1e-4), (loss2, ref2)

    print("KERNEL_OK")
</pallas_src>

<mosaic_0001>
module attributes {stable_mosaic.version = 11 : i64} {
  func.func @kernel(%arg0: i32, %arg1: memref<16x128xf32, #tpu.memory_space<vmem>>, %arg2: memref<16x128xf32, #tpu.memory_space<vmem>>, %arg3: memref<1x128xf32, #tpu.memory_space<vmem>>) attributes {dimension_semantics = [#tpu.dimension_semantics<parallel>], iteration_bounds = array<i64: 1>, scalar_prefetch = 0 : i64, scratch_operands = 0 : i64, tpu.core_type = #tpu.core_type<tc>, window_params = [{transform_indices = @transform_0, window_bounds = array<i64: 16, 128>}, {transform_indices = @transform_1, window_bounds = array<i64: 16, 128>}, {transform_indices = @transform_2, window_bounds = array<i64: 1, 128>}]} {
    %c0 = arith.constant 0 : index
    %c0_0 = arith.constant 0 : index
    %0 = vector.load %arg1[%c0, %c0_0] : memref<16x128xf32, #tpu.memory_space<vmem>>, vector<16x128xf32>
    %c0_1 = arith.constant 0 : index
    %c0_2 = arith.constant 0 : index
    %1 = vector.load %arg2[%c0_1, %c0_2] : memref<16x128xf32, #tpu.memory_space<vmem>>, vector<16x128xf32>
    %cst = arith.constant 6.000000e-01 : f32
    %2 = vector.broadcast %cst : f32 to vector<16x128xf32>
    %3 = arith.mulf %1, %2 : vector<16x128xf32>
    %cst_3 = arith.constant 2.000000e-01 : f32
    %4 = vector.broadcast %cst_3 : f32 to vector<16x128xf32>
    %5 = arith.addf %3, %4 : vector<16x128xf32>
    %cst_4 = arith.constant 0.000000e+00 : f32
    %6 = vector.broadcast %cst_4 : f32 to vector<16x128xf32>
    %7 = arith.maximumf %0, %6 : vector<16x128xf32>
    %8 = arith.mulf %0, %5 : vector<16x128xf32>
    %9 = arith.subf %7, %8 : vector<16x128xf32>
    %10 = math.absf %0 : vector<16x128xf32>
    %cst_5 = arith.constant 0.000000e+00 : f32
    %11 = vector.broadcast %cst_5 : f32 to vector<16x128xf32>
    %12 = arith.subf %11, %10 : vector<16x128xf32>
    %13 = math.exp %12 : vector<16x128xf32>
    %14 = math.log1p %13 : vector<16x128xf32>
    %15 = arith.addf %9, %14 : vector<16x128xf32>
    %cst_6 = arith.constant dense<0.000000e+00> : vector<128xf32>
    %16 = vector.multi_reduction <add>, %15, %cst_6 [0] : vector<16x128xf32> to vector<128xf32>
    %17 = vector.shape_cast %16 : vector<128xf32> to vector<1x128xf32>
    %c0_7 = arith.constant 0 : index
    %c0_8 = arith.constant 0 : index
    %18 = vector.load %arg3[%c0_7, %c0_8] : memref<1x128xf32, #tpu.memory_space<vmem>>, vector<1x128xf32>
    tpu.vector_store %arg3[%c0_7, %c0_8], %17 {strides = array<i32>} : memref<1x128xf32, #tpu.memory_space<vmem>>, vector<1x128xf32>,
    return
  }
  func.func @transform_0(%arg0: i32) -> (i32, i32) {
    %c0_i32 = arith.constant 0 : i32
    %c0_i32_0 = arith.constant 0 : i32
    return %arg0, %c0_i32 : i32, i32
  }
  func.func @transform_1(%arg0: i32) -> (i32, i32) {
    %c0_i32 = arith.constant 0 : i32
    %c0_i32_0 = arith.constant 0 : i32
    return %arg0, %c0_i32 : i32, i32
  }
  func.func @transform_2(%arg0: i32) -> (i32, i32) {
    %c0_i32 = arith.constant 0 : i32
    %c0_i32_0 = arith.constant 0 : i32
    return %arg0, %c0_i32 : i32, i32
  }
}

</mosaic_0001>

<bundles_post_ra>
// kernel: tpu_custom_call.1
= control target key start
LH: loop header
LB: loop body
LE: loop exit
PB: predicated region body
PF: predicated region fallthrough
CT: control target
= control target key end

     0   :  { %7 = vsyncpa [#allocation3], 0  ;;  %s247_s0 = inlined_call_operand.hbm [shape: f32[16,128], index: 0, kind: input, shape index: {}]   ;;  %s248_s1 = inlined_call_operand.hbm [shape: f32[16,128], index: 1, kind: input, shape index: {}]   ;;  %s249_s2 = inlined_call_operand.hbm [shape: f32[1,128], index: 2, kind: output, shape index: {}]  }
   0x1   :  { %8 = vsyncpa [#allocation6], 0 }
   0x2   :  { %9 = vsyncpa [#allocation4], 0  ;;  %s191_s9 = smov [#allocation2]   ;;  %s119_s13 = scalar_lea.hbm %s247_s0, 256 }
   0x3   :  { %s15_s10 = sshll.u32 %s191_s9, 4  ;;  %p120_p0 = scmp.ne.s32.totalorder %s247_s0, %s119_s13  ;;  %s16_s10 = int_to_ptr.vmem [resolvable:$true] %s15_s10 }
   0x4   :  { %p123_p1 = scmp.lt.u32.totalorder %s119_s13, %s247_s0 }
   0x6   :  { %p125_p2 = pnand %p123_p1, %p120_p0 }
   0x8   :  { %128 = shalt.err (!%p125_p2)
}
   0x9   :  { %s129_s18 = scalar_lea.vmem %s16_s10, 256  ;;  %p134_p4 = scmp.lt.s32.totalorder %s16_s10, %s16_s10 }
   0xa   :  { %p130_p3 = scmp.ne.s32.totalorder %s16_s10, %s129_s18  ;;  %p135_p5 = scmp.lt.s32.totalorder %s129_s18, %s129_s18 }
   0xc   :  { %p136_p6 = por %p135_p5, %p134_p4 }
   0xe   :  { %p137_p7 = pnand %p136_p6, %p130_p3 }
  0x10   :  { %140 = shalt.err (!%p137_p7)
}
  0x11   :  { %s192_s19 = smov 128   ;;  %s193_s20 = smov 8  }
  0x12   :  { %21 = dma.hbm_to_vmem [thread:$0]  %s247_s0, 256, %s16_s10, [#allocation3], %s192_s19, %s192_s19, %s193_s20  }
  0x13   :  { %s194_s23 = smov [#allocation5]   ;;  %s141_s27 = scalar_lea.hbm %s248_s1, 256 }
  0x14   :  { %s27_s24 = sshll.u32 %s194_s23, 4  ;;  %p142_p8 = scmp.ne.s32.totalorder %s248_s1, %s141_s27  ;;  %s28_s24 = int_to_ptr.vmem [resolvable:$true] %s27_s24 }
  0x15   :  { %p145_p9 = scmp.lt.u32.totalorder %s141_s27, %s248_s1 }
  0x17   :  { %p147_p10 = pnand %p145_p9, %p142_p8 }
  0x19   :  { %150 = shalt.err (!%p147_p10)
}
  0x1a   :  { %s151_s4 = scalar_lea.vmem %s28_s24, 256  ;;  %p156_p12 = scmp.lt.s32.totalorder %s28_s24, %s28_s24 }
  0x1b   :  { %p152_p11 = scmp.ne.s32.totalorder %s28_s24, %s151_s4  ;;  %p157_p13 = scmp.lt.s32.totalorder %s151_s4, %s151_s4 }
  0x1d   :  { %p158_p0 = por %p157_p13, %p156_p12 }
  0x1f   :  { %p159_p1 = pnand %p158_p0, %p152_p11 }
  0x21   :  { %162 = shalt.err (!%p159_p1)
}
  0x22   :  { %33 = dma.hbm_to_vmem [thread:$0]  %s248_s1, 256, %s28_s24, [#allocation6], %s192_s19, %s192_s19, %s193_s20  }
  0x23   :  { %185 = dma.done.wait [#allocation3], 256  }
  0x24   :  { %186 = vsyncadd [#allocation3], 4294967040 }
  0x25   :  { %187 = dma.done.wait [#allocation6], 256  }
  0x26   :  { %188 = vsyncadd [#allocation6], 4294967040  ;;  %v40_v0 = vld [vmem:[#allocation2] sm:$0xff]  ;;  %v41_v1 = vld [vmem:[#allocation2 + $0x8] sm:$0xff]  ;;  %s195_s1 = smov [#allocation7]  }
  0x27   :  { %v54_v2 = vand.u32 2147483647, %v40_v0  ;;  %v55_v3 = vand.u32 2147483647, %v41_v1  ;;  %v42_v8 = vld [vmem:[#allocation5] sm:$0xff]  ;;  %v43_v9 = vld [vmem:[#allocation5 + $0x8] sm:$0xff] }
  0x28   :  { %v44_v12 = vmul.f32 0.6, %v42_v8  ;;  %v45_v14 = vmul.f32 0.6, %v43_v9  ;;  %v48_v21 = vmax.f32 %v40_v0, 0.0  ;;  %v49_v25 = vmax.f32 %v41_v1, 0.0 }
  0x29   :  { %v56_v4 = vsub.f32 0.0, %v54_v2  ;;  %v57_v5 = vsub.f32 0.0, %v55_v3  ;;  %s96_s6 = sshll.u32 %s195_s1, 4  ;;  %s97_s6 = int_to_ptr.vmem [resolvable:$true] %s96_s6 }
  0x2a   :  { %v46_v17 = vadd.f32 0.2, %v44_v12  ;;  %v47_v19 = vadd.f32 0.2, %v45_v14  ;;  %s163_s7 = scalar_lea.vmem %s97_s6, 16  ;;  %s167_s8 = scalar_lea.vmem %s97_s6, 32 }
  0x2b   :  { %v58_v6 = vmul.f32 1.442695, %v56_v4  ;;  %v60_v7 = vmul.f32 1.442695, %v57_v5  ;;  %p164_p2 = scmp.ne.s32.totalorder %s97_s6, %s163_s7  ;;  %p168_p3 = scmp.lt.s32.totalorder %s97_s6, %s97_s6 }
  0x2c   :  { %v50_v22 = vmul.f32 %v46_v17, %v40_v0  ;;  %v51_v26 = vmul.f32 %v47_v19, %v41_v1  ;;  %p169_p4 = scmp.lt.s32.totalorder %s167_s8, %s163_s7 }
  0x2d   :  { %111 = vpow2.f32 %v58_v6 }
  0x2e   :  { %113 = vpow2.f32 %v60_v7  ;;  %v52_v30 = vsub.f32 %v48_v21, %v50_v22  ;;  %v53_v33 = vsub.f32 %v49_v25, %v51_v26  ;;  %p170_p5 = por %p169_p4, %p168_p3 }
  0x30   :  { %p171_p6 = pnand %p170_p5, %p164_p2 }
  0x37   :  { %v112_v10 = vpop.eup %111 }
  0x38   :  { %v114_v11 = vpop.eup %113  ;;  %v62_v13 = vadd.f32 1.0, %v112_v10  ;;  %v65_v16 = vmul.f32 -0.5, %v112_v10  ;;  %v68_v23 = vand.u32 2147483647, %v112_v10 }
  0x39   :  { %v71_v15 = vadd.f32 1.0, %v114_v11  ;;  %v74_v18 = vmul.f32 -0.5, %v114_v11  ;;  %v77_v27 = vand.u32 2147483647, %v114_v11 }
  0x3a   :  { %115 = vlog2.f32 %v62_v13  ;;  %v66_v20 = vadd.f32 1.0, %v65_v16  ;;  %vm69_vm0 = vcmp.lt.f32.partialorder %v68_v23, 0.0004427343 }
  0x3b   :  { %117 = vlog2.f32 %v71_v15  ;;  %v75_v24 = vadd.f32 1.0, %v74_v18  ;;  %vm78_vm1 = vcmp.lt.f32.partialorder %v77_v27, 0.0004427343 }
  0x3c   :  { %v67_v28 = vmul.f32 %v112_v10, %v66_v20 }
  0x3d   :  { %v76_v31 = vmul.f32 %v114_v11, %v75_v24 }
  0x44   :  { %v116_v29 = vpop.eup %115 }
  0x45   :  { %v118_v32 = vpop.eup %117  ;;  %v64_v34 = vmul.f32 0.6931472, %v116_v29 }
  0x46   :  { %v73_v35 = vmul.f32 0.6931472, %v118_v32 }
  0x47   :  { %v70_v36 = vsel %vm69_vm0, %v67_v28, %v64_v34 }
  0x48   :  { %v79_v37 = vsel %vm78_vm1, %v76_v31, %v73_v35  ;;  %v80_v38 = vadd.f32 %v70_v36, %v52_v30 }
  0x49   :  { %v81_v39 = vadd.f32 %v79_v37, %v53_v33 }
  0x4b   :  { %v82_v40 = vadd.f32 %v81_v39, %v80_v38 }
  0x4d   :  { %v83_v41 = vrot.slane %v82_v40, 4 }
  0x4f   :  { %v84_v42 = vadd.f32 %v83_v41, %v82_v40 }
  0x51   :  { %v85_v43 = vrot.slane %v84_v42, 2 }
  0x53   :  { %v86_v44 = vadd.f32 %v85_v43, %v84_v42 }
  0x55   :  { %v87_v45 = vrot.slane %v86_v44, 1 }
  0x57   :  { %v88_v46 = vadd.f32 %v87_v45, %v86_v44 }
  0x59   :  { %89 = vst [vmem:[#allocation7] sm:$0x1] %v88_v46 }
  0x5a   :  { %174 = shalt.err (!%p171_p6)
}
  0x5b   :  { %s175_s11 = scalar_lea.hbm %s249_s2, 16 }
  0x5c   :  { %p176_p7 = scmp.ne.s32.totalorder %s249_s2, %s175_s11  ;;  %p179_p8 = scmp.lt.u32.totalorder %s175_s11, %s249_s2 }
  0x5e   :  { %p181_p9 = pnand %p179_p8, %p176_p7 }
  0x60   :  { %184 = shalt.err (!%p181_p9)
}
  0x61   :  { %99 = dma.vmem_to_hbm [thread:$0]  %s97_s6, 16, %s249_s2, [#allocation4]  }
  0x62   :  { %189 = dma.done.wait [#allocation4], 16  }
  0x63   :  { %190 = vsyncadd [#allocation4], 4294967280 }
  0x64   :  { %103 = vsyncpa [#allocation3], 1 }
  0x65   :  { %104 = vsyncpa [#allocation6], 1 }
  0x66   :  { %105 = vsyncpa [#allocation4], 1 }

</bundles_post_ra>
